<compile_context>
chip_gen: v6e
topology: v6e:2x2x1
jax: 0.10.0
libtpu: 0.0.40
codegen_flags: <defaults>
</compile_context>

<pallas_src>
import functools

import jax
import jax.numpy as jnp
from jax.experimental import pallas as pl
from jax.experimental.pallas import tpu as pltpu


def _bilinear_matrix(out_size: int, in_size: int) -> jnp.ndarray:
    """Interpolation matrix W such that (W @ v) bilinearly resizes a length-
    `in_size` signal to `out_size`, using PyTorch's align_corners=False rule."""
    out_idx = jnp.arange(out_size, dtype=jnp.float32)
    scale = in_size / out_size
    src = (out_idx + 0.5) * scale - 0.5
    # PyTorch clamps negative source coords to 0 (align_corners=False).
    src = jnp.maximum(src, 0.0)
    i0 = jnp.floor(src).astype(jnp.int32)
    i0 = jnp.minimum(i0, in_size - 1)
    i1 = jnp.minimum(i0 + 1, in_size - 1)
    frac = src - i0.astype(jnp.float32)
    w = jnp.zeros((out_size, in_size), jnp.float32)
    rows = jnp.arange(out_size)
    w = w.at[rows, i0].add(1.0 - frac)
    w = w.at[rows, i1].add(frac)
    return w


def _fused_resize_matrix(h_out: int, h_in: int, w_out: int, w_in: int) -> jnp.ndarray:
    """K with K[h*W_in + wi, o*W_out + p] = W_h[o, h] * W_w[p, wi], so that
    out_flat = x_flat @ K  performs the full 2-D bilinear resize."""
    w_h = _bilinear_matrix(h_out, h_in)      # (H_out, H_in)
    w_w = _bilinear_matrix(w_out, w_in)      # (W_out, W_in)
    k = jnp.einsum("oh,pw->hwop", w_h, w_w)  # (H_in, W_in, H_out, W_out)
    return k.reshape(h_in * w_in, h_out * w_out)


def _resize_kernel(x_ref, k_ref, o_ref):
    # x_ref: (BC, H_in*W_in)   lane-dense block of flattened input slabs
    # k_ref: (H_in*W_in, H_out*W_out) fused interpolation matrix (VMEM-resident)
    # o_ref: (BC, H_out*W_out) lane-dense block of flattened output slabs
    o_ref[...] = jnp.dot(
        x_ref[...].astype(k_ref.dtype),
        k_ref[...],
        preferred_element_type=jnp.float32,
    ).astype(o_ref.dtype)


def _round_up(x: int, m: int) -> int:
    return (x + m - 1) // m * m


def _pick_block_channels(nc: int, in_elems: int, out_elems: int,
                         bytes_per_elem: int) -> int:
    """How many (n, c) slabs to process per grid step.

    Large enough to amortize per-step overhead and produce big DMAs; small
    enough that the double-buffered input+output blocks (plus the resident
    interpolation matrix) fit comfortably in scoped VMEM on all generations
    (v7x has only 64 MiB physical VMEM vs 128 MiB on v5e/v6e)."""
    stream_budget = 12 * 1024 * 1024                            # in+out double buffers
    row_bytes = 2 * bytes_per_elem * (in_elems + out_elems)     # double-buffered
    bc = stream_budget // max(row_bytes, 1)
    bc = max(8, min(bc, 1024))
    bc = (bc // 8) * 8                      # keep sublane tiling (multiple of 8)
    return min(bc, _round_up(nc, 8))


@functools.partial(jax.jit, static_argnames=("height", "width", "block_channels"))
def resize_bilinear(x: jnp.ndarray, *, height: int, width: int,
                    block_channels: int | None = None) -> jnp.ndarray:
    """Equivalent of Resize(height, width)(x) for NCHW input."""
    n, c, h_in, w_in = x.shape
    h_out, w_out = height, width
    nc = n * c
    in_elems = h_in * w_in
    out_elems = h_out * w_out

    # TODO(synk): for large spatial sizes the fused interpolation matrix does
    # not fit in VMEM; a two-pass (rows-then-cols) blocked kernel would be
    # needed there.  This module is used on small images, so guard instead.
    if in_elems * out_elems * 4 > 4 * 1024 * 1024:
        raise NotImplementedError(
            "resize_bilinear: spatial size too large for the fused "
            "single-matmul formulation; use a two-pass kernel.")

    # bf16 inputs -> bf16 K (MXU-native); everything else computes in f32.
    k_dtype = jnp.bfloat16 if x.dtype == jnp.bfloat16 else jnp.float32
    k_mat = _fused_resize_matrix(h_out, h_in, w_out, w_in).astype(k_dtype)

    bytes_per_elem = max(jnp.dtype(x.dtype).itemsize, jnp.dtype(k_dtype).itemsize)
    bc = block_channels if block_channels is not None else _pick_block_channels(
        nc, in_elems, out_elems, bytes_per_elem)

    # Flatten each (H_in, W_in) slab into one lane-dense row.  This is a pure
    # metadata reshape of the NCHW byte layout: no transpose, no extra HBM pass.
    x_flat = x.reshape(nc, in_elems)

    # Ragged last channel-block is handled by Pallas (masked boundary stores),
    # so no wrapper-side pad/slice and no extra HBM round trip.
    grid = (pl.cdiv(nc, bc),)

    out_flat = pl.pallas_call(
        _resize_kernel,
        out_shape=jax.ShapeDtypeStruct((nc, out_elems), x.dtype),
        grid_spec=pltpu.PrefetchScalarGridSpec(
            num_scalar_prefetch=0,
            grid=grid,
            in_specs=[
                # (BC, H_in*W_in) block of flattened slabs; 128-aligned lane dim.
                # (If DMA latency is ever exposed on v7x, this is the spec to
                # bump with pipeline_mode=pl.Buffered(3).)
                pl.BlockSpec((bc, in_elems), lambda i: (i, 0)),
                # Fused interpolation matrix: constant index_map -> DMA'd once,
                # stays VMEM-resident across the whole grid.
                pl.BlockSpec((in_elems, out_elems), lambda i: (0, 0)),
            ],
            out_specs=pl.BlockSpec((bc, out_elems), lambda i: (i, 0)),
        ),
        compiler_params=pltpu.CompilerParams(
            # Independent channel blocks: shards across v7x's two TensorCores;
            # no-op on single-TC v5e/v6e.
            dimension_semantics=("parallel",),
            vmem_limit_bytes=32 * 1024 * 1024,
        ),
    )(x_flat, k_mat)

    # Metadata-only reshape back to NCHW.
    return out_flat.reshape(n, c, h_out, w_out)


def _reference_resize(x, height, width):
    """Pure-JAX reference: two-matrix bilinear formulation, no Pallas."""
    w_h = _bilinear_matrix(height, x.shape[2])
    w_w = _bilinear_matrix(width, x.shape[3])
    return jnp.einsum("oh,nchw,pw->ncop", w_h, x.astype(jnp.float32), w_w).astype(x.dtype)


if __name__ == "__main__":
    key = jax.random.PRNGKey(0)
    # Small NCHW input, consistent with an image tensor fed to nn.Upsample.
    x = jax.random.normal(key, (2, 4, 16, 16), dtype=jnp.float32)

    H_OUT, W_OUT = 24, 20  # the module's (height, width) target size

    out = resize_bilinear(x, height=H_OUT, width=W_OUT)
    out = jax.block_until_ready(out)

    assert out.shape == (2, 4, H_OUT, W_OUT), out.shape
    assert out.dtype == x.dtype

    ref = _reference_resize(x, H_OUT, W_OUT)
    assert jnp.allclose(out, ref, atol=1e-5, rtol=1e-5), float(
        jnp.max(jnp.abs(out.astype(jnp.float32) - ref.astype(jnp.float32))))

    print("KERNEL_OK")
</pallas_src>

<mosaic_0001>
module attributes {stable_mosaic.version = 11 : i64} {
  func.func private @main(%arg0: i32) attributes {dimension_semantics = [#tpu.dimension_semantics<core_parallel>], iteration_bounds = array<i64: 2>, tpu.core_type = #tpu.core_type<sc_scalar_subcore>, window_params = []} {
    return
  }
}

module attributes {stable_mosaic.version = 11 : i64} {
  func.func private @main(%arg0: i32) attributes {dimension_semantics = [#tpu.dimension_semantics<core_parallel>], iteration_bounds = array<i64: 2>, tpu.core_type = #tpu.core_type<sc_scalar_subcore>, window_params = []} {
    return
  }
}

module attributes {stable_mosaic.version = 11 : i64} {
  func.func @_resize_kernel(%arg0: i32, %arg1: memref<8x256xf32, #tpu.memory_space<vmem>>, %arg2: memref<256x480xf32, #tpu.memory_space<vmem>>, %arg3: memref<8x480xf32, #tpu.memory_space<vmem>>) attributes {dimension_semantics = [#tpu.dimension_semantics<parallel>], iteration_bounds = array<i64: 1>, scalar_prefetch = 0 : i64, scratch_operands = 0 : i64, tpu.core_type = #tpu.core_type<tc>, window_params = [{transform_indices = @transform_0, window_bounds = array<i64: 8, 256>}, {pipeline_mode = #tpu.pipeline_mode<synchronous>, transform_indices = @transform_1, window_bounds = array<i64: 256, 480>}, {transform_indices = @transform_2, window_bounds = array<i64: 8, 480>}]} {
    %c0 = arith.constant 0 : index
    %c0_0 = arith.constant 0 : index
    %0 = vector.load %arg1[%c0, %c0_0] : memref<8x256xf32, #tpu.memory_space<vmem>>, vector<8x256xf32>
    %c0_1 = arith.constant 0 : index
    %c0_2 = arith.constant 0 : index
    %1 = vector.load %arg2[%c0_1, %c0_2] : memref<256x480xf32, #tpu.memory_space<vmem>>, vector<256x480xf32>
    %cst = arith.constant dense<0.000000e+00> : vector<8x480xf32>
    %2 = tpu.matmul %0, %1, %cst {dimension_numbers = #tpu.dot_dimension_numbers<[1], [0], [0], [1], [0, 0, 1, 1], [], []>} : vector<8x256xf32>, vector<256x480xf32>, vector<8x480xf32> -> vector<8x480xf32>
    %c0_3 = arith.constant 0 : index
    %c0_4 = arith.constant 0 : index
    %3 = vector.load %arg3[%c0_3, %c0_4] : memref<8x480xf32, #tpu.memory_space<vmem>>, vector<8x480xf32>
    tpu.vector_store %arg3[%c0_3, %c0_4], %2 {strides = array<i32>} : memref<8x480xf32, #tpu.memory_space<vmem>>, vector<8x480xf32>,
    return
  }
  func.func @transform_0(%arg0: i32) -> (i32, i32) {
    %c0_i32 = arith.constant 0 : i32
    %c0_i32_0 = arith.constant 0 : i32
    return %arg0, %c0_i32 : i32, i32
  }
  func.func @transform_1(%arg0: i32) -> (i32, i32) {
    %c0_i32 = arith.constant 0 : i32
    %c0_i32_0 = arith.constant 0 : i32
    %c0_i32_1 = arith.constant 0 : i32
    return %c0_i32, %c0_i32_0 : i32, i32
  }
  func.func @transform_2(%arg0: i32) -> (i32, i32) {
    %c0_i32 = arith.constant 0 : i32
    %c0_i32_0 = arith.constant 0 : i32
    return %arg0, %c0_i32 : i32, i32
  }
}

</mosaic_0001>

<bundles_post_ra>
// kernel: resize_bilinear.1
= control target key start
LH: loop header
LB: loop body
LE: loop exit
PB: predicated region body
PF: predicated region fallthrough
CT: control target
= control target key end

     0   :  { %vm286_vm0 = vcmask 785408   ;;  %s709_s1 = inlined_call_operand.vmem [shape: f32[256,480], index: 1, kind: input, shape index: {}]   ;;  %s710_s0 = inlined_call_operand.vmem [shape: f32[8,256], index: 0, kind: input, shape index: {}]   ;;  %s711_s2 = inlined_call_operand.vmem [shape: f32[8,480], index: 2, kind: output, shape index: {}]  }
   0x1   :  { %v74_v0 = vld [vmem:[%s709_s1 + $0x1e8] sm:$0xff]  ;;  %v76_v1 = vld [vmem:[%s709_s1 + $0x1f8] sm:$0xff]  ;;  %v73_v2 = vld [vmem:[%s709_s1 + $0x1e0] sm:$0xff] }
   0x2   :  { %141 = vmatprep.subr.mxu0 %v74_v0  ;;  %212 = vmatprep.subr.mxu1 %v76_v1  ;;  %v75_v3 = vld [vmem:[%s709_s1 + $0x1f0] sm:$0xff]  ;;  %v70_v4 = vld [vmem:[%s709_s1 + $0x1c8] sm:$0xff]  ;;  %v72_v5 = vld [vmem:[%s709_s1 + $0x1d8] sm:$0xff] }
   0x3   :  { %142 = vmatpush1.msra.mxu0 %v73_v2  ;;  %213 = vmatpush1.msra.mxu1 %v75_v3  ;;  %v69_v6 = vld [vmem:[%s709_s1 + $0x1c0] sm:$0xff]  ;;  %v71_v7 = vld [vmem:[%s709_s1 + $0x1d0] sm:$0xff]  ;;  %v66_v8 = vld [vmem:[%s709_s1 + $0x1a8] sm:$0xff] }
   0x4   :  { %143 = vmatprep.subr.mxu0 %v70_v4  ;;  %214 = vmatprep.subr.mxu1 %v72_v5  ;;  %v68_v9 = vld [vmem:[%s709_s1 + $0x1b8] sm:$0xff]  ;;  %v65_v10 = vld [vmem:[%s709_s1 + $0x1a0] sm:$0xff]  ;;  %v67_v11 = vld [vmem:[%s709_s1 + $0x1b0] sm:$0xff] }
   0x5   :  { %144 = vmatpush1.msra.mxu0 %v69_v6  ;;  %215 = vmatpush1.msra.mxu1 %v71_v7  ;;  %v62_v12 = vld [vmem:[%s709_s1 + $0x188] sm:$0xff]  ;;  %v64_v13 = vld [vmem:[%s709_s1 + $0x198] sm:$0xff]  ;;  %v61_v14 = vld [vmem:[%s709_s1 + $0x180] sm:$0xff] }
   0x6   :  { %145 = vmatprep.subr.mxu0 %v66_v8  ;;  %216 = vmatprep.subr.mxu1 %v68_v9  ;;  %v63_v15 = vld [vmem:[%s709_s1 + $0x190] sm:$0xff]  ;;  %v58_v16 = vld [vmem:[%s709_s1 + $0x168] sm:$0xff]  ;;  %v60_v17 = vld [vmem:[%s709_s1 + $0x178] sm:$0xff] }
   0x7   :  { %146 = vmatpush1.msra.mxu0 %v65_v10  ;;  %217 = vmatpush1.msra.mxu1 %v67_v11  ;;  %v57_v18 = vld [vmem:[%s709_s1 + $0x160] sm:$0xff]  ;;  %v59_v19 = vld [vmem:[%s709_s1 + $0x170] sm:$0xff]  ;;  %v54_v20 = vld [vmem:[%s709_s1 + $0x148] sm:$0xff] }
   0x8   :  { %147 = vmatprep.subr.mxu0 %v62_v12  ;;  %218 = vmatprep.subr.mxu1 %v64_v13  ;;  %v56_v21 = vld [vmem:[%s709_s1 + $0x158] sm:$0xff]  ;;  %v53_v22 = vld [vmem:[%s709_s1 + $0x140] sm:$0xff]  ;;  %v55_v23 = vld [vmem:[%s709_s1 + $0x150] sm:$0xff] }
   0x9   :  { %148 = vmatpush1.msra.mxu0 %v61_v14  ;;  %219 = vmatpush1.msra.mxu1 %v63_v15  ;;  %v50_v24 = vld [vmem:[%s709_s1 + $0x128] sm:$0xff]  ;;  %v52_v25 = vld [vmem:[%s709_s1 + $0x138] sm:$0xff]  ;;  %v49_v26 = vld [vmem:[%s709_s1 + $0x120] sm:$0xff] }
   0xa   :  { %149 = vmatprep.subr.mxu0 %v58_v16  ;;  %220 = vmatprep.subr.mxu1 %v60_v17  ;;  %v51_v27 = vld [vmem:[%s709_s1 + $0x130] sm:$0xff]  ;;  %v46_v28 = vld [vmem:[%s709_s1 + $0x108] sm:$0xff]  ;;  %v48_v29 = vld [vmem:[%s709_s1 + $0x118] sm:$0xff] }
   0xb   :  { %150 = vmatpush1.msra.mxu0 %v57_v18  ;;  %221 = vmatpush1.msra.mxu1 %v59_v19  ;;  %v45_v30 = vld [vmem:[%s709_s1 + $0x100] sm:$0xff]  ;;  %v47_v31 = vld [vmem:[%s709_s1 + $0x110] sm:$0xff]  ;;  %v42_v32 = vld [vmem:[%s709_s1 + $0xe8] sm:$0xff] }
   0xc   :  { %151 = vmatprep.subr.mxu0 %v54_v20  ;;  %222 = vmatprep.subr.mxu1 %v56_v21  ;;  %v44_v33 = vld [vmem:[%s709_s1 + $0xf8] sm:$0xff]  ;;  %v41_v34 = vld [vmem:[%s709_s1 + $0xe0] sm:$0xff]  ;;  %v43_v35 = vld [vmem:[%s709_s1 + $0xf0] sm:$0xff] }
   0xd   :  { %152 = vmatpush1.msra.mxu0 %v53_v22  ;;  %223 = vmatpush1.msra.mxu1 %v55_v23  ;;  %v38_v36 = vld [vmem:[%s709_s1 + $0xc8] sm:$0xff]  ;;  %v40_v37 = vld [vmem:[%s709_s1 + $0xd8] sm:$0xff]  ;;  %v37_v38 = vld [vmem:[%s709_s1 + $0xc0] sm:$0xff] }
   0xe   :  { %153 = vmatprep.subr.mxu0 %v50_v24  ;;  %224 = vmatprep.subr.mxu1 %v52_v25  ;;  %v39_v39 = vld [vmem:[%s709_s1 + $0xd0] sm:$0xff]  ;;  %v34_v40 = vld [vmem:[%s709_s1 + $0xa8] sm:$0xff]  ;;  %v36_v41 = vld [vmem:[%s709_s1 + $0xb8] sm:$0xff] }
   0xf   :  { %154 = vmatpush1.msra.mxu0 %v49_v26  ;;  %225 = vmatpush1.msra.mxu1 %v51_v27  ;;  %v33_v42 = vld [vmem:[%s709_s1 + $0xa0] sm:$0xff]  ;;  %v35_v43 = vld [vmem:[%s709_s1 + $0xb0] sm:$0xff]  ;;  %v30_v44 = vld [vmem:[%s709_s1 + $0x88] sm:$0xff] }
  0x10   :  { %155 = vmatprep.subr.mxu0 %v46_v28  ;;  %226 = vmatprep.subr.mxu1 %v48_v29  ;;  %v32_v45 = vld [vmem:[%s709_s1 + $0x98] sm:$0xff]  ;;  %v29_v46 = vld [vmem:[%s709_s1 + $0x80] sm:$0xff]  ;;  %v31_v47 = vld [vmem:[%s709_s1 + $0x90] sm:$0xff] }
  0x11   :  { %156 = vmatpush1.msra.mxu0 %v45_v30  ;;  %227 = vmatpush1.msra.mxu1 %v47_v31  ;;  %v26_v48 = vld [vmem:[%s709_s1 + $0x68] sm:$0xff]  ;;  %v28_v49 = vld [vmem:[%s709_s1 + $0x78] sm:$0xff]  ;;  %v25_v50 = vld [vmem:[%s709_s1 + $0x60] sm:$0xff] }
  0x12   :  { %157 = vmatprep.subr.mxu0 %v42_v32  ;;  %228 = vmatprep.subr.mxu1 %v44_v33  ;;  %v27_v51 = vld [vmem:[%s709_s1 + $0x70] sm:$0xff]  ;;  %v22_v52 = vld [vmem:[%s709_s1 + $0x48] sm:$0xff]  ;;  %v24_v53 = vld [vmem:[%s709_s1 + $0x58] sm:$0xff] }
  0x13   :  { %158 = vmatpush1.msra.mxu0 %v41_v34  ;;  %229 = vmatpush1.msra.mxu1 %v43_v35  ;;  %v21_v54 = vld [vmem:[%s709_s1 + $0x40] sm:$0xff]  ;;  %v23_v55 = vld [vmem:[%s709_s1 + $0x50] sm:$0xff]  ;;  %v18_v56 = vld [vmem:[%s709_s1 + $0x28] sm:$0xff] }
  0x14   :  { %159 = vmatprep.subr.mxu0 %v38_v36  ;;  %230 = vmatprep.subr.mxu1 %v40_v37  ;;  %v20_v57 = vld [vmem:[%s709_s1 + $0x38] sm:$0xff]  ;;  %v17_v58 = vld [vmem:[%s709_s1 + $0x20] sm:$0xff]  ;;  %v19_v59 = vld [vmem:[%s709_s1 + $0x30] sm:$0xff] }
  0x15   :  { %160 = vmatpush1.msra.mxu0 %v37_v38  ;;  %231 = vmatpush1.msra.mxu1 %v39_v39  ;;  %v14_v60 = vld [vmem:[%s709_s1 + $0x8] sm:$0xff]  ;;  %v16_v61 = vld [vmem:[%s709_s1 + $0x18] sm:$0xff]  ;;  %v13_v62 = vld [vmem:[%s709_s1] sm:$0xff] }
  0x16   :  { %161 = vmatprep.subr.mxu0 %v34_v40  ;;  %232 = vmatprep.subr.mxu1 %v36_v41  ;;  %v15_v63 = vld [vmem:[%s709_s1 + $0x10] sm:$0xff]  ;;  %v138_v0 = vld [vmem:[%s709_s1 + $0x3e8] sm:$0xff]  ;;  %v140_v1 = vld [vmem:[%s709_s1 + $0x3f8] sm:$0xff] }
  0x17   :  { %162 = vmatpush1.msra.mxu0 %v33_v42  ;;  %233 = vmatpush1.msra.mxu1 %v35_v43  ;;  %v137_v2 = vld [vmem:[%s709_s1 + $0x3e0] sm:$0xff]  ;;  %v139_v3 = vld [vmem:[%s709_s1 + $0x3f0] sm:$0xff]  ;;  %v134_v4 = vld [vmem:[%s709_s1 + $0x3c8] sm:$0xff] }
  0x18   :  { %163 = vmatprep.subr.mxu0 %v30_v44  ;;  %234 = vmatprep.subr.mxu1 %v32_v45  ;;  %v136_v5 = vld [vmem:[%s709_s1 + $0x3d8] sm:$0xff]  ;;  %v133_v6 = vld [vmem:[%s709_s1 + $0x3c0] sm:$0xff]  ;;  %v135_v7 = vld [vmem:[%s709_s1 + $0x3d0] sm:$0xff] }
  0x19   :  { %164 = vmatpush1.msra.mxu0 %v29_v46  ;;  %235 = vmatpush1.msra.mxu1 %v31_v47  ;;  %v130_v8 = vld [vmem:[%s709_s1 + $0x3a8] sm:$0xff]  ;;  %v132_v9 = vld [vmem:[%s709_s1 + $0x3b8] sm:$0xff]  ;;  %v129_v10 = vld [vmem:[%s709_s1 + $0x3a0] sm:$0xff] }
  0x1a   :  { %165 = vmatprep.subr.mxu0 %v26_v48  ;;  %236 = vmatprep.subr.mxu1 %v28_v49  ;;  %v131_v11 = vld [vmem:[%s709_s1 + $0x3b0] sm:$0xff]  ;;  %v126_v12 = vld [vmem:[%s709_s1 + $0x388] sm:$0xff]  ;;  %v128_v13 = vld [vmem:[%s709_s1 + $0x398] sm:$0xff] }
  0x1b   :  { %166 = vmatpush1.msra.mxu0 %v25_v50  ;;  %237 = vmatpush1.msra.mxu1 %v27_v51  ;;  %v125_v14 = vld [vmem:[%s709_s1 + $0x380] sm:$0xff]  ;;  %v127_v15 = vld [vmem:[%s709_s1 + $0x390] sm:$0xff]  ;;  %v122_v16 = vld [vmem:[%s709_s1 + $0x368] sm:$0xff] }
  0x1c   :  { %167 = vmatprep.subr.mxu0 %v22_v52  ;;  %238 = vmatprep.subr.mxu1 %v24_v53  ;;  %v124_v17 = vld [vmem:[%s709_s1 + $0x378] sm:$0xff]  ;;  %v121_v18 = vld [vmem:[%s709_s1 + $0x360] sm:$0xff]  ;;  %v123_v19 = vld [vmem:[%s709_s1 + $0x370] sm:$0xff] }
  0x1d   :  { %168 = vmatpush1.msra.mxu0 %v21_v54  ;;  %239 = vmatpush1.msra.mxu1 %v23_v55  ;;  %v118_v20 = vld [vmem:[%s709_s1 + $0x348] sm:$0xff]  ;;  %v120_v21 = vld [vmem:[%s709_s1 + $0x358] sm:$0xff]  ;;  %v117_v22 = vld [vmem:[%s709_s1 + $0x340] sm:$0xff] }
  0x1e   :  { %169 = vmatprep.subr.mxu0 %v18_v56  ;;  %240 = vmatprep.subr.mxu1 %v20_v57  ;;  %v119_v23 = vld [vmem:[%s709_s1 + $0x350] sm:$0xff]  ;;  %v114_v24 = vld [vmem:[%s709_s1 + $0x328] sm:$0xff]  ;;  %v116_v25 = vld [vmem:[%s709_s1 + $0x338] sm:$0xff] }
  0x1f   :  { %170 = vmatpush1.msra.mxu0 %v17_v58  ;;  %241 = vmatpush1.msra.mxu1 %v19_v59  ;;  %v113_v26 = vld [vmem:[%s709_s1 + $0x320] sm:$0xff]  ;;  %v115_v27 = vld [vmem:[%s709_s1 + $0x330] sm:$0xff]  ;;  %v110_v28 = vld [vmem:[%s709_s1 + $0x308] sm:$0xff] }
  0x20   :  { %171 = vmatprep.subr.mxu0 %v14_v60  ;;  %242 = vmatprep.subr.mxu1 %v16_v61  ;;  %v112_v29 = vld [vmem:[%s709_s1 + $0x318] sm:$0xff]  ;;  %v109_v30 = vld [vmem:[%s709_s1 + $0x300] sm:$0xff]  ;;  %v111_v31 = vld [vmem:[%s709_s1 + $0x310] sm:$0xff] }
  0x21   :  { %172 = vmatpush1.msra.mxu0 %v13_v62  ;;  %243 = vmatpush1.msra.mxu1 %v15_v63  ;;  %v106_v32 = vld [vmem:[%s709_s1 + $0x2e8] sm:$0xff]  ;;  %v108_v33 = vld [vmem:[%s709_s1 + $0x2f8] sm:$0xff]  ;;  %v105_v34 = vld [vmem:[%s709_s1 + $0x2e0] sm:$0xff] }
  0x22   :  { %173 = vmatprep.subr.mxu0 %v138_v0  ;;  %244 = vmatprep.subr.mxu1 %v140_v1  ;;  %v107_v35 = vld [vmem:[%s709_s1 + $0x2f0] sm:$0xff]  ;;  %v102_v36 = vld [vmem:[%s709_s1 + $0x2c8] sm:$0xff]  ;;  %v104_v37 = vld [vmem:[%s709_s1 + $0x2d8] sm:$0xff] }
  0x23   :  { %174 = vmatpush2.msra.mxu0 %v137_v2  ;;  %245 = vmatpush2.msra.mxu1 %v139_v3  ;;  %v101_v38 = vld [vmem:[%s709_s1 + $0x2c0] sm:$0xff]  ;;  %v103_v39 = vld [vmem:[%s709_s1 + $0x2d0] sm:$0xff]  ;;  %v98_v40 = vld [vmem:[%s709_s1 + $0x2a8] sm:$0xff] }
  0x24   :  { %175 = vmatprep.subr.mxu0 %v134_v4  ;;  %246 = vmatprep.subr.mxu1 %v136_v5  ;;  %v100_v41 = vld [vmem:[%s709_s1 + $0x2b8] sm:$0xff]  ;;  %v97_v42 = vld [vmem:[%s709_s1 + $0x2a0] sm:$0xff]  ;;  %v99_v43 = vld [vmem:[%s709_s1 + $0x2b0] sm:$0xff] }
  0x25   :  { %176 = vmatpush2.msra.mxu0 %v133_v6  ;;  %247 = vmatpush2.msra.mxu1 %v135_v7  ;;  %v94_v44 = vld [vmem:[%s709_s1 + $0x288] sm:$0xff]  ;;  %v96_v45 = vld [vmem:[%s709_s1 + $0x298] sm:$0xff]  ;;  %v93_v46 = vld [vmem:[%s709_s1 + $0x280] sm:$0xff] }
  0x26   :  { %177 = vmatprep.subr.mxu0 %v130_v8  ;;  %248 = vmatprep.subr.mxu1 %v132_v9  ;;  %v95_v47 = vld [vmem:[%s709_s1 + $0x290] sm:$0xff]  ;;  %v90_v48 = vld [vmem:[%s709_s1 + $0x268] sm:$0xff]  ;;  %v92_v49 = vld [vmem:[%s709_s1 + $0x278] sm:$0xff] }
  0x27   :  { %178 = vmatpush2.msra.mxu0 %v129_v10  ;;  %249 = vmatpush2.msra.mxu1 %v131_v11  ;;  %v89_v50 = vld [vmem:[%s709_s1 + $0x260] sm:$0xff]  ;;  %v91_v51 = vld [vmem:[%s709_s1 + $0x270] sm:$0xff]  ;;  %v86_v52 = vld [vmem:[%s709_s1 + $0x248] sm:$0xff] }
  0x28   :  { %179 = vmatprep.subr.mxu0 %v126_v12  ;;  %250 = vmatprep.subr.mxu1 %v128_v13  ;;  %v88_v53 = vld [vmem:[%s709_s1 + $0x258] sm:$0xff]  ;;  %v85_v54 = vld [vmem:[%s709_s1 + $0x240] sm:$0xff]  ;;  %v87_v55 = vld [vmem:[%s709_s1 + $0x250] sm:$0xff] }
  0x29   :  { %180 = vmatpush2.msra.mxu0 %v125_v14  ;;  %251 = vmatpush2.msra.mxu1 %v127_v15  ;;  %v82_v56 = vld [vmem:[%s709_s1 + $0x228] sm:$0xff]  ;;  %v84_v57 = vld [vmem:[%s709_s1 + $0x238] sm:$0xff]  ;;  %v81_v58 = vld [vmem:[%s709_s1 + $0x220] sm:$0xff] }
  0x2a   :  { %181 = vmatprep.subr.mxu0 %v122_v16  ;;  %252 = vmatprep.subr.mxu1 %v124_v17  ;;  %v83_v59 = vld [vmem:[%s709_s1 + $0x230] sm:$0xff]  ;;  %v78_v60 = vld [vmem:[%s709_s1 + $0x208] sm:$0xff]  ;;  %v80_v61 = vld [vmem:[%s709_s1 + $0x218] sm:$0xff] }
  0x2b   :  { %182 = vmatpush2.msra.mxu0 %v121_v18  ;;  %253 = vmatpush2.msra.mxu1 %v123_v19  ;;  %v77_v62 = vld [vmem:[%s709_s1 + $0x200] sm:$0xff]  ;;  %v12_v63 = vld [vmem:[%s710_s0 + $0x8] sm:$0xff]  ;;  %v79_v0 = vld [vmem:[%s709_s1 + $0x210] sm:$0xff] }
  0x2c   :  { %183 = vmatprep.subr.mxu0 %v118_v20  ;;  %254 = vmatprep.subr.mxu1 %v120_v21  ;;  %v11_v1 = vld [vmem:[%s710_s0] sm:$0xff] }
  0x2d   :  { %184 = vmatpush2.msra.mxu0 %v117_v22  ;;  %255 = vmatpush2.msra.mxu1 %v119_v23 }
  0x2e   :  { %185 = vmatprep.subr.mxu0 %v114_v24  ;;  %256 = vmatprep.subr.mxu1 %v116_v25 }
  0x2f   :  { %186 = vmatpush2.msra.mxu0 %v113_v26  ;;  %257 = vmatpush2.msra.mxu1 %v115_v27 }
  0x30   :  { %187 = vmatprep.subr.mxu0 %v110_v28  ;;  %258 = vmatprep.subr.mxu1 %v112_v29 }
  0x31   :  { %188 = vmatpush2.msra.mxu0 %v109_v30  ;;  %259 = vmatpush2.msra.mxu1 %v111_v31 }
  0x32   :  { %189 = vmatprep.subr.mxu0 %v106_v32  ;;  %260 = vmatprep.subr.mxu1 %v108_v33 }
  0x33   :  { %190 = vmatpush2.msra.mxu0 %v105_v34  ;;  %261 = vmatpush2.msra.mxu1 %v107_v35 }
  0x34   :  { %191 = vmatprep.subr.mxu0 %v102_v36  ;;  %262 = vmatprep.subr.mxu1 %v104_v37 }
  0x35   :  { %192 = vmatpush2.msra.mxu0 %v101_v38  ;;  %263 = vmatpush2.msra.mxu1 %v103_v39 }
  0x36   :  { %193 = vmatprep.subr.mxu0 %v98_v40  ;;  %264 = vmatprep.subr.mxu1 %v100_v41 }
  0x37   :  { %194 = vmatpush2.msra.mxu0 %v97_v42  ;;  %265 = vmatpush2.msra.mxu1 %v99_v43 }
  0x38   :  { %195 = vmatprep.subr.mxu0 %v94_v44  ;;  %266 = vmatprep.subr.mxu1 %v96_v45 }
  0x39   :  { %196 = vmatpush2.msra.mxu0 %v93_v46  ;;  %267 = vmatpush2.msra.mxu1 %v95_v47 }
  0x3a   :  { %197 = vmatprep.subr.mxu0 %v90_v48  ;;  %268 = vmatprep.subr.mxu1 %v92_v49 }
  0x3b   :  { %198 = vmatpush2.msra.mxu0 %v89_v50  ;;  %269 = vmatpush2.msra.mxu1 %v91_v51 }
  0x3c   :  { %199 = vmatprep.subr.mxu0 %v86_v52  ;;  %270 = vmatprep.subr.mxu1 %v88_v53 }
  0x3d   :  { %200 = vmatpush2.msra.mxu0 %v85_v54  ;;  %271 = vmatpush2.msra.mxu1 %v87_v55 }
  0x3e   :  { %201 = vmatprep.subr.mxu0 %v82_v56  ;;  %272 = vmatprep.subr.mxu1 %v84_v57 }
  0x3f   :  { %202 = vmatpush2.msra.mxu0 %v81_v58  ;;  %273 = vmatpush2.msra.mxu1 %v83_v59 }
  0x40   :  { %203 = vmatprep.subr.mxu0 %v78_v60  ;;  %274 = vmatprep.subr.mxu1 %v80_v61 }
  0x41   :  { %204 = vmatpush2.msra.mxu0 %v77_v62  ;;  %205 = vmatprep.mubr.f32.mxu0 %v12_v63 }
  0x42   :  { %275 = vmatpush2.msra.mxu1 %v79_v0  ;;  %276 = vmatprep.mubr.f32.mxu1 %v12_v63 }
  0x43   :  { %206 = vmatmul.mubr.f32.vlgmr.msra.gmra.mxu0 %v11_v1  ;;  %277 = vmatmul.mubr.f32.vlgmr.msra.gmra.mxu1 %v11_v1 }
 0x103   :  { %v207_v2 = vpop.f32.mrf.mxu0  ;;  %v278_v3 = vpop.f32.mrf.mxu1 }
 0x104   :  { %283 = vst [vmem:[%s711_s2] sm:$0xff] %v207_v2  ;;  %285 = vst [vmem:[%s711_s2 + $0x10] sm:$0xff] %v278_v3 }
 0x105   :  { %v209_v4 = vpop.f32.mrf.mxu0  ;;  %v280_v5 = vpop.f32.mrf.mxu1 }
 0x106   :  { %284 = vst [vmem:[%s711_s2 + $0x8] sm:$0xff] %v209_v4  ;;  %287 = vst.msk [vmem:[%s711_s2 + $0x18] sm:$0xff] %vm286_vm0, %v280_v5 }

</bundles_post_ra>
